<compile_context>
chip_gen: v6e
topology: v6e:2x2x1
jax: 0.10.0
libtpu: 0.0.40
codegen_flags: <defaults>
</compile_context>

<pallas_src>
import jax
import jax.numpy as jnp
import numpy as np
from jax.experimental import pallas as pl
from jax.experimental.pallas import tpu as pltpu


def _round_up(n, m):
    return ((n + m - 1) // m) * m


def _make_mlp_kernel(compute_dtype):
    """Kernel factory: compute_dtype (bf16 or f32) is a compile-time constant."""

    def kernel(x_ref, w1_ref, b1_ref, w2_ref, b2_ref, w3_ref, b3_ref, o_ref):
        cd = compute_dtype
        x = x_ref[...].astype(cd)            # f32 -> bf16 cast fused in-kernel

        # Linear(F_in -> H1) + ReLU (nonlin between hidden layers)
        h1 = jnp.dot(x, w1_ref[...].astype(cd),
                     preferred_element_type=jnp.float32) + b1_ref[...]
        h1 = jnp.maximum(h1, 0.0)

        # Linear(H1 -> H2) (last hidden layer: no nonlin inside self.module)
        h2 = jnp.dot(h1.astype(cd), w2_ref[...].astype(cd),
                     preferred_element_type=jnp.float32) + b2_ref[...]

        # final_nonlin (ReLU) then final Linear(H2 -> num_classes)
        h2 = jnp.maximum(h2, 0.0)
        y = jnp.dot(h2.astype(cd), w3_ref[...].astype(cd),
                    preferred_element_type=jnp.float32) + b3_ref[...]

        o_ref[...] = y.astype(o_ref.dtype)

    return kernel


def _choose_tile_b(B, tile_b_max, num_cores_hint):
    """Pick a batch tile: big (amortize grid-step overhead), multiple of 128
    when possible, >=2 grid steps when B > 128 (v7x megacore split), and never
    larger than B (so every block dim is either /8 or the full array dim)."""
    tile = max(128, min(tile_b_max, _round_up(B, 128)))
    if B > 128 and pl.cdiv(B, tile) < num_cores_hint:
        tile = _round_up(pl.cdiv(B, num_cores_hint), 128)
    if tile > B:
        tile = B          # single block equal to the full batch dim (always legal)
    return tile


def mlp_forward(x, params, *, tile_b_max=8192, use_bf16=True, num_cores_hint=2):
    """x: [B, F_in] float32. params: dict of W[in,out] / b[1,out] float32.

    Note: use_bf16=True runs the matmuls with bf16 inputs / f32 accumulation
    (differs from a strict PyTorch f32 forward at ~1e-2 rtol); use_bf16=False
    is exact f32.
    """
    B, F_in = x.shape
    H1 = params["w1"].shape[1]
    H2 = params["w2"].shape[1]
    C = params["w3"].shape[1]
    cd = jnp.bfloat16 if use_bf16 else jnp.float32

    tile_b = _choose_tile_b(B, tile_b_max, num_cores_hint)
    grid = (pl.cdiv(B, tile_b),)

    def resident(a):     # weights/biases: constant block index -> fetched once
        return pl.BlockSpec(a.shape, lambda i: (0, 0))

    w1, b1 = params["w1"], params["b1"]
    w2, b2 = params["w2"], params["b2"]
    w3, b3 = params["w3"], params["b3"]

    weight_bytes = sum(int(np.prod(a.shape)) * 4 for a in (w1, b1, w2, b2, w3, b3))
    cost = pl.CostEstimate(
        flops=2 * B * (F_in * H1 + H1 * H2 + H2 * C),
        transcendentals=0,
        bytes_accessed=B * (F_in * 4 + C * 4) + weight_bytes,
    )

    out = pl.pallas_call(
        _make_mlp_kernel(cd),
        out_shape=jax.ShapeDtypeStruct((B, C), jnp.float32),
        grid=grid,
        in_specs=[
            pl.BlockSpec((tile_b, F_in), lambda i: (i, 0)),   # x: tiled over batch
            resident(w1), resident(b1),
            resident(w2), resident(b2),
            resident(w3), resident(b3),
        ],
        out_specs=pl.BlockSpec((tile_b, C), lambda i: (i, 0)),
        compiler_params=pltpu.CompilerParams(
            dimension_semantics=("parallel",),
            vmem_limit_bytes=32 * 1024 * 1024,
        ),
        cost_estimate=cost,
    )(x, w1, b1, w2, b2, w3, b3)

    return out


def init_params(key, f_in, h1, h2, n_classes):
    """Deterministic init. Weights stored [in, out] (PyTorch Linear transposed)."""
    ks = jax.random.split(key, 6)

    def linear(kw, kb, fan_in, fan_out):
        bound = 1.0 / np.sqrt(fan_in)
        w = jax.random.uniform(kw, (fan_in, fan_out), jnp.float32, -bound, bound)
        b = jax.random.uniform(kb, (1, fan_out), jnp.float32, -bound, bound)
        return w, b

    w1, b1 = linear(ks[0], ks[1], f_in, h1)
    w2, b2 = linear(ks[2], ks[3], h1, h2)
    w3, b3 = linear(ks[4], ks[5], h2, n_classes)
    return dict(w1=w1, b1=b1, w2=w2, b2=b2, w3=w3, b3=b3)


def mlp_reference(x, p, *, use_bf16=True):
    """Pure-JAX reference with the same precision policy as the kernel."""
    cd = jnp.bfloat16 if use_bf16 else jnp.float32
    h1 = jnp.dot(x.astype(cd), p["w1"].astype(cd),
                 preferred_element_type=jnp.float32) + p["b1"]
    h1 = jnp.maximum(h1, 0.0)
    h2 = jnp.dot(h1.astype(cd), p["w2"].astype(cd),
                 preferred_element_type=jnp.float32) + p["b2"]
    h2 = jnp.maximum(h2, 0.0)
    y = jnp.dot(h2.astype(cd), p["w3"].astype(cd),
                preferred_element_type=jnp.float32) + p["b3"]
    return y  # reshape to (..., num_classes) is a no-op for num_classes > 1


if __name__ == "__main__":
    F_IN, H1, H2, N_CLASSES = 32, 64, 32, 8

    key = jax.random.PRNGKey(0)
    k_x, k_x2, k_p = jax.random.split(key, 3)
    params = init_params(k_p, F_IN, H1, H2, N_CLASSES)

    # Small batch, single (full-batch) block, bf16 matmul path.
    x = jax.random.normal(k_x, (16, F_IN), jnp.float32)
    out = jax.block_until_ready(mlp_forward(x, params, use_bf16=True))
    ref = mlp_reference(x, params, use_bf16=True)
    np.testing.assert_allclose(np.asarray(out), np.asarray(ref), rtol=1e-2, atol=1e-2)

    # Exact f32 path against the f32 reference.
    out_f32 = jax.block_until_ready(mlp_forward(x, params, use_bf16=False))
    ref_f32 = mlp_reference(x, params, use_bf16=False)
    np.testing.assert_allclose(np.asarray(out_f32), np.asarray(ref_f32),
                               rtol=1e-5, atol=1e-5)

    # Ragged batch: 3 grid steps of 128 rows, last block partial (44 valid rows),
    # no padding / slicing copies anywhere.
    x2 = jax.random.normal(k_x2, (300, F_IN), jnp.float32)
    out2 = jax.block_until_ready(
        mlp_forward(x2, params, tile_b_max=128, use_bf16=True))
    ref2 = mlp_reference(x2, params, use_bf16=True)
    np.testing.assert_allclose(np.asarray(out2), np.asarray(ref2), rtol=1e-2, atol=1e-2)

    print("KERNEL_OK")
</pallas_src>

<mosaic_0001>
module attributes {stable_mosaic.version = 11 : i64} {
  func.func @kernel(%arg0: i32, %arg1: memref<16x32xf32, #tpu.memory_space<vmem>>, %arg2: memref<32x64xf32, #tpu.memory_space<vmem>>, %arg3: memref<1x64xf32, #tpu.memory_space<vmem>>, %arg4: memref<64x32xf32, #tpu.memory_space<vmem>>, %arg5: memref<1x32xf32, #tpu.memory_space<vmem>>, %arg6: memref<32x8xf32, #tpu.memory_space<vmem>>, %arg7: memref<1x8xf32, #tpu.memory_space<vmem>>, %arg8: memref<16x8xf32, #tpu.memory_space<vmem>>) attributes {dimension_semantics = [#tpu.dimension_semantics<parallel>], iteration_bounds = array<i64: 1>, scalar_prefetch = 0 : i64, scratch_operands = 0 : i64, tpu.core_type = #tpu.core_type<tc>, window_params = [{transform_indices = @transform_0, window_bounds = array<i64: 16, 32>}, {pipeline_mode = #tpu.pipeline_mode<synchronous>, transform_indices = @transform_1, window_bounds = array<i64: 32, 64>}, {pipeline_mode = #tpu.pipeline_mode<synchronous>, transform_indices = @transform_2, window_bounds = array<i64: 1, 64>}, {pipeline_mode = #tpu.pipeline_mode<synchronous>, transform_indices = @transform_3, window_bounds = array<i64: 64, 32>}, {pipeline_mode = #tpu.pipeline_mode<synchronous>, transform_indices = @transform_4, window_bounds = array<i64: 1, 32>}, {pipeline_mode = #tpu.pipeline_mode<synchronous>, transform_indices = @transform_5, window_bounds = array<i64: 32, 8>}, {pipeline_mode = #tpu.pipeline_mode<synchronous>, transform_indices = @transform_6, window_bounds = array<i64: 1, 8>}, {transform_indices = @transform_7, window_bounds = array<i64: 16, 8>}]} {
    %c0 = arith.constant 0 : index
    %c0_0 = arith.constant 0 : index
    %0 = vector.load %arg1[%c0, %c0_0] : memref<16x32xf32, #tpu.memory_space<vmem>>, vector<16x32xf32>
    %1 = arith.truncf %0 : vector<16x32xf32> to vector<16x32xbf16>
    %c0_1 = arith.constant 0 : index
    %c0_2 = arith.constant 0 : index
    %2 = vector.load %arg2[%c0_1, %c0_2] : memref<32x64xf32, #tpu.memory_space<vmem>>, vector<32x64xf32>
    %3 = arith.truncf %2 : vector<32x64xf32> to vector<32x64xbf16>
    %cst = arith.constant dense<0.000000e+00> : vector<16x64xf32>
    %4 = tpu.matmul %1, %3, %cst {dimension_numbers = #tpu.dot_dimension_numbers<[1], [0], [0], [1], [0, 0, 1, 1], [], []>} : vector<16x32xbf16>, vector<32x64xbf16>, vector<16x64xf32> -> vector<16x64xf32>
    %c0_3 = arith.constant 0 : index
    %c0_4 = arith.constant 0 : index
    %5 = vector.load %arg3[%c0_3, %c0_4] : memref<1x64xf32, #tpu.memory_space<vmem>>, vector<1x64xf32>
    %6 = vector.broadcast %5 : vector<1x64xf32> to vector<16x64xf32>
    %7 = arith.addf %4, %6 : vector<16x64xf32>
    %cst_5 = arith.constant 0.000000e+00 : f32
    %8 = vector.broadcast %cst_5 : f32 to vector<16x64xf32>
    %9 = arith.maximumf %7, %8 : vector<16x64xf32>
    %10 = arith.truncf %9 : vector<16x64xf32> to vector<16x64xbf16>
    %c0_6 = arith.constant 0 : index
    %c0_7 = arith.constant 0 : index
    %11 = vector.load %arg4[%c0_6, %c0_7] : memref<64x32xf32, #tpu.memory_space<vmem>>, vector<64x32xf32>
    %12 = arith.truncf %11 : vector<64x32xf32> to vector<64x32xbf16>
    %cst_8 = arith.constant dense<0.000000e+00> : vector<16x32xf32>
    %13 = tpu.matmul %10, %12, %cst_8 {dimension_numbers = #tpu.dot_dimension_numbers<[1], [0], [0], [1], [0, 0, 1, 1], [], []>} : vector<16x64xbf16>, vector<64x32xbf16>, vector<16x32xf32> -> vector<16x32xf32>
    %c0_9 = arith.constant 0 : index
    %c0_10 = arith.constant 0 : index
    %14 = vector.load %arg5[%c0_9, %c0_10] : memref<1x32xf32, #tpu.memory_space<vmem>>, vector<1x32xf32>
    %15 = vector.broadcast %14 : vector<1x32xf32> to vector<16x32xf32>
    %16 = arith.addf %13, %15 : vector<16x32xf32>
    %cst_11 = arith.constant 0.000000e+00 : f32
    %17 = vector.broadcast %cst_11 : f32 to vector<16x32xf32>
    %18 = arith.maximumf %16, %17 : vector<16x32xf32>
    %19 = arith.truncf %18 : vector<16x32xf32> to vector<16x32xbf16>
    %c0_12 = arith.constant 0 : index
    %c0_13 = arith.constant 0 : index
    %20 = vector.load %arg6[%c0_12, %c0_13] : memref<32x8xf32, #tpu.memory_space<vmem>>, vector<32x8xf32>
    %21 = arith.truncf %20 : vector<32x8xf32> to vector<32x8xbf16>
    %cst_14 = arith.constant dense<0.000000e+00> : vector<16x8xf32>
    %22 = tpu.matmul %19, %21, %cst_14 {dimension_numbers = #tpu.dot_dimension_numbers<[1], [0], [0], [1], [0, 0, 1, 1], [], []>} : vector<16x32xbf16>, vector<32x8xbf16>, vector<16x8xf32> -> vector<16x8xf32>
    %c0_15 = arith.constant 0 : index
    %c0_16 = arith.constant 0 : index
    %23 = vector.load %arg7[%c0_15, %c0_16] : memref<1x8xf32, #tpu.memory_space<vmem>>, vector<1x8xf32>
    %24 = vector.broadcast %23 : vector<1x8xf32> to vector<16x8xf32>
    %25 = arith.addf %22, %24 : vector<16x8xf32>
    %c0_17 = arith.constant 0 : index
    %c0_18 = arith.constant 0 : index
    %26 = vector.load %arg8[%c0_17, %c0_18] : memref<16x8xf32, #tpu.memory_space<vmem>>, vector<16x8xf32>
    tpu.vector_store %arg8[%c0_17, %c0_18], %25 {strides = array<i32>} : memref<16x8xf32, #tpu.memory_space<vmem>>, vector<16x8xf32>,
    return
  }
  func.func @transform_0(%arg0: i32) -> (i32, i32) {
    %c0_i32 = arith.constant 0 : i32
    %c0_i32_0 = arith.constant 0 : i32
    return %arg0, %c0_i32 : i32, i32
  }
  func.func @transform_1(%arg0: i32) -> (i32, i32) {
    %c0_i32 = arith.constant 0 : i32
    %c0_i32_0 = arith.constant 0 : i32
    %c0_i32_1 = arith.constant 0 : i32
    return %c0_i32, %c0_i32_0 : i32, i32
  }
  func.func @transform_2(%arg0: i32) -> (i32, i32) {
    %c0_i32 = arith.constant 0 : i32
    %c0_i32_0 = arith.constant 0 : i32
    %c0_i32_1 = arith.constant 0 : i32
    return %c0_i32, %c0_i32_0 : i32, i32
  }
  func.func @transform_3(%arg0: i32) -> (i32, i32) {
    %c0_i32 = arith.constant 0 : i32
    %c0_i32_0 = arith.constant 0 : i32
    %c0_i32_1 = arith.constant 0 : i32
    return %c0_i32, %c0_i32_0 : i32, i32
  }
  func.func @transform_4(%arg0: i32) -> (i32, i32) {
    %c0_i32 = arith.constant 0 : i32
    %c0_i32_0 = arith.constant 0 : i32
    %c0_i32_1 = arith.constant 0 : i32
    return %c0_i32, %c0_i32_0 : i32, i32
  }
  func.func @transform_5(%arg0: i32) -> (i32, i32) {
    %c0_i32 = arith.constant 0 : i32
    %c0_i32_0 = arith.constant 0 : i32
    %c0_i32_1 = arith.constant 0 : i32
    return %c0_i32, %c0_i32_0 : i32, i32
  }
  func.func @transform_6(%arg0: i32) -> (i32, i32) {
    %c0_i32 = arith.constant 0 : i32
    %c0_i32_0 = arith.constant 0 : i32
    %c0_i32_1 = arith.constant 0 : i32
    return %c0_i32, %c0_i32_0 : i32, i32
  }
  func.func @transform_7(%arg0: i32) -> (i32, i32) {
    %c0_i32 = arith.constant 0 : i32
    %c0_i32_0 = arith.constant 0 : i32
    return %arg0, %c0_i32 : i32, i32
  }
}

</mosaic_0001>

<bundles_post_ra>
// kernel: tpu_custom_call.1
= control target key start
LH: loop header
LB: loop body
LE: loop exit
PB: predicated region body
PF: predicated region fallthrough
CT: control target
= control target key end

     0   :  { %v269_v0 = vmov 0.0   ;;  %vm270_vm0 = vmmov 0   ;;  %vm43_vm1 = vcmask 261120   ;;  %vm110_vm2 = vcmask 523264   ;;  %s385_s1 = inlined_call_operand.vmem [shape: f32[32,64], index: 1, kind: input, shape index: {}]   ;;  %s386_s3 = inlined_call_operand.vmem [shape: f32[64,32], index: 3, kind: input, shape index: {}]   ;;  %s387_s0 = inlined_call_operand.vmem [shape: f32[16,32], index: 0, kind: input, shape index: {}]   ;;  %s388_s2 = inlined_call_operand.vmem [shape: f32[1,64], index: 2, kind: input, shape index: {}]   ;;  %s389_s5 = inlined_call_operand.vmem [shape: f32[32,8], index: 5, kind: input, shape index: {}]   ;;  %s390_s4 = inlined_call_operand.vmem [shape: f32[1,32], index: 4, kind: input, shape index: {}]   ;;  %s391_s6 = inlined_call_operand.vmem [shape: f32[1,8], index: 6, kind: input, shape index: {}]   ;;  %s392_s7 = inlined_call_operand.vmem [shape: f32[16,8], index: 7, kind: output, shape index: {}]  }
   0x1   :  { %239 = vmatprep.subr.bf16.mxu0 %v269_v0  ;;  %v32_v1 = vld [vmem:[%s385_s1 + $0x10] sm:$0xff]  ;;  %v33_v2 = vld [vmem:[%s385_s1 + $0x18] sm:$0xff]  ;;  %v30_v3 = vld [vmem:[%s385_s1] sm:$0xff]  ;;  %243 = vmatprep.mubr.msk.bf16.mxu0 %vm270_vm0, %v269_v0  ;;  %vm215_vm3 = vcmask 64512  }
   0x2   :  { %v35_v4 = vpack.c.bf16 %v33_v2, %v32_v1  ;;  %v31_v5 = vld [vmem:[%s385_s1 + $0x8] sm:$0xff]  ;;  %247 = vmatprep.subr.bf16.mxu1 %v269_v0  ;;  %255 = vmatprep.mubr.msk.bf16.mxu1 %vm270_vm0, %v269_v0  ;;  %v97_v6 = vld [vmem:[%s386_s3 + $0x30] sm:$0xff]  ;;  %v98_v7 = vld [vmem:[%s386_s3 + $0x38] sm:$0xff] }
   0x3   :  { %v34_v8 = vpack.c.bf16 %v31_v5, %v30_v3  ;;  %v27_v9 = vld [vmem:[%s387_s0] sm:$0xff]  ;;  %v28_v10 = vld [vmem:[%s387_s0 + $0x8] sm:$0xff]  ;;  %v102_v11 = vpack.c.bf16 %v98_v7, %v97_v6  ;;  %v93_v16 = vld [vmem:[%s386_s3 + $0x10] sm:$0xff] }
   0x4   :  { %240 = vmatpush3.bf16.msra.mxu0 %v35_v4  ;;  %v29_v12 = vpack.c.bf16 %v28_v10, %v27_v9  ;;  %v95_v13 = vld [vmem:[%s386_s3 + $0x20] sm:$0xff]  ;;  %v96_v14 = vld [vmem:[%s386_s3 + $0x28] sm:$0xff]  ;;  %v94_v17 = vld [vmem:[%s386_s3 + $0x18] sm:$0xff] }
   0x5   :  { %241 = vmatprep.subr.bf16.mxu0 %v269_v0  ;;  %248 = vmatpush3.bf16.msra.mxu1 %v102_v11  ;;  %v101_v15 = vpack.c.bf16 %v96_v14, %v95_v13  ;;  %v100_v18 = vpack.c.bf16 %v94_v17, %v93_v16  ;;  %v91_v19 = vld [vmem:[%s386_s3] sm:$0xff]  ;;  %v92_v20 = vld [vmem:[%s386_s3 + $0x8] sm:$0xff]  ;;  %v160_v32 = vld [vmem:[%s389_s5 + $0x10] sm:$0xff] }
   0x6   :  { %249 = vmatprep.subr.bf16.mxu1 %v269_v0  ;;  %v99_v21 = vpack.c.bf16 %v92_v20, %v91_v19  ;;  %v222_v22 = vld [vmem:[%s388_s2] ss:$0 sm:$0xff]  ;;  %v161_v33 = vld [vmem:[%s389_s5 + $0x18] sm:$0xff]  ;;  %v159_v36 = vld [vmem:[%s389_s5 + $0x8] sm:$0xff] }
   0x7   :  { %v163_v34 = vpack.c.bf16 %v161_v33, %v160_v32  ;;  %v158_v35 = vld [vmem:[%s389_s5] sm:$0xff] }
   0x8   :  { %242 = vmatpush3.bf16.msra.mxu0 %v34_v8  ;;  %v162_v37 = vpack.c.bf16 %v159_v36, %v158_v35  ;;  %v224_v38 = vld [vmem:[%s390_s4] ss:$0 sm:$0xff] }
   0x9   :  { %259 = vmatprep.subr.bf16.mxu0 %v269_v0  ;;  %250 = vmatpush3.bf16.msra.mxu1 %v101_v15  ;;  %v226_v48 = vld [vmem:[%s391_s6] ss:$0 sm:$0xff] }
   0xa   :  { %251 = vmatprep.subr.bf16.mxu1 %v269_v0 }
   0xb   :  { %244 = vmatmul.mubr.msk.bf16.vlgmr.msra.gmra.mxu0 %vm43_vm1, %v29_v12 }
   0xc   :  { %263 = vmatprep.mubr.msk.bf16.mxu0 %vm270_vm0, %v269_v0  ;;  %260 = vmatpush3.bf16.msra.mxu0 %v163_v34 }
   0xd   :  { %252 = vmatpush3.bf16.msra.mxu1 %v100_v18  ;;  %261 = vmatprep.subr.bf16.mxu0 %v269_v0 }
   0xe   :  { %253 = vmatprep.subr.bf16.mxu1 %v269_v0 }
  0x10   :  { %262 = vmatpush3.bf16.msra.mxu0 %v162_v37 }
  0x11   :  { %254 = vmatpush3.bf16.msra.mxu1 %v99_v21 }
  0xcb   :  { %v81_v23 = vpop.f32.mrf.mxu0 }
  0xcc   :  { %v82_v25 = vadd.f32 %v222_v22, %v81_v23 }
  0xcd   :  { %v245_v24 = vpop.f32.mrf.mxu0 }
  0xce   :  { %v88_v29 = vmax.f32 %v82_v25, 0.0 }
  0xcf   :  { %v84_v26 = vpop.f32.mrf.mxu0 }
  0xd0   :  { %v85_v27 = vadd.f32 %v222_v22, %v84_v26 }
  0xd1   :  { %v246_v28 = vpop.f32.mrf.mxu0 }
  0xd2   :  { %v89_v30 = vmax.f32 %v85_v27, 0.0 }
  0xd4   :  { %v90_v31 = vpack.c.bf16 %v89_v30, %v88_v29 }
  0xd6   :  { %256 = vmatmul.mubr.msk.bf16.vlgmr.msra.gmra.mxu1 %vm110_vm2, %v90_v31 }
 0x196   :  { %v148_v39 = vpop.f32.mrf.mxu1 }
 0x197   :  { %v149_v41 = vadd.f32 %v224_v38, %v148_v39 }
 0x198   :  { %v257_v40 = vpop.f32.mrf.mxu1 }
 0x199   :  { %v155_v45 = vmax.f32 %v149_v41, 0.0 }
 0x19a   :  { %v151_v42 = vpop.f32.mrf.mxu1 }
 0x19b   :  { %v152_v43 = vadd.f32 %v224_v38, %v151_v42 }
 0x19c   :  { %v258_v44 = vpop.f32.mrf.mxu1 }
 0x19d   :  { %v156_v46 = vmax.f32 %v152_v43, 0.0 }
 0x19f   :  { %v157_v47 = vpack.c.bf16 %v156_v46, %v155_v45 }
 0x1a1   :  { %264 = vmatmul.mubr.msk.bf16.vlgmr.msra.gmra.mxu0 %vm43_vm1, %v157_v47 }
 0x261   :  { %v208_v49 = vpop.f32.mrf.mxu0 }
 0x262   :  { %v209_v50 = vadd.f32 %v226_v48, %v208_v49 }
 0x263   :  { %v265_v51 = vpop.f32.mrf.mxu0 }
 0x264   :  { %216 = vst.msk [vmem:[%s392_s7] sm:$0xff] %vm215_vm3, %v209_v50 }
 0x265   :  { %v211_v52 = vpop.f32.mrf.mxu0 }
 0x266   :  { %v212_v53 = vadd.f32 %v226_v48, %v211_v52 }
 0x267   :  { %v266_v54 = vpop.f32.mrf.mxu0 }
 0x268   :  { %217 = vst.msk [vmem:[%s392_s7 + $0x8] sm:$0xff] %vm215_vm3, %v212_v53 }

</bundles_post_ra>
